<compile_context>
chip_gen: v6e
topology: v6e:2x2x1
jax: 0.10.0
libtpu: 0.0.40
codegen_flags: <defaults>
</compile_context>

<pallas_src>
import jax
import jax.numpy as jnp
from jax.experimental import pallas as pl
from jax.experimental.pallas import tpu as pltpu


def _normalize_kernel(x_ref, scale_ref, shift_ref, o_ref):
    # x_ref / o_ref : (TM, TN) lane-dense tile of the flattened (B*C, H*W) view
    # scale_ref / shift_ref : (TM, 1) per-row f32 columns (row = b*C + c)
    x = x_ref[...].astype(jnp.float32)
    # Single fused multiply-add; (TM, 1) column broadcasts across lanes once.
    o_ref[...] = (x * scale_ref[...] + shift_ref[...]).astype(o_ref.dtype)


def _pick_block(dim, unit, max_elems):
    """Largest block <= max_elems that is a multiple of `unit` and divides `dim`
    exactly, or the full `dim` (both satisfy the (8,128) block-shape rule)."""
    if dim <= max_elems:
        return dim
    if dim % unit != 0:
        return dim  # cannot tile cleanly along this axis -> use full extent
    blk = max(unit, (max_elems // unit) * unit)
    while dim % blk != 0:
        blk -= unit
    return blk


def normalize_layer(x, means, sds, *, target_tile_bytes=2 * 1024 * 1024):
    """(x - means[c]) / sds[c] broadcast over N, H, W. x is NCHW."""
    B, C, H, W = x.shape
    R = B * C
    L = H * W

    # Fold normalization into an affine transform, kept in f32 for precision.
    means_f = jnp.asarray(means, dtype=jnp.float32)
    sds_f = jnp.asarray(sds, dtype=jnp.float32)
    scale = 1.0 / sds_f            # (C,)
    shift = -means_f / sds_f       # (C,)

    # Per-row (row = b*C + c) columns so a tile can span several channels.
    row_scale = jnp.tile(scale, B).reshape(R, 1)   # (B*C, 1) f32
    row_shift = jnp.tile(shift, B).reshape(R, 1)   # (B*C, 1) f32

    # Flatten to a lane-dense 2D view (free for contiguous NCHW).
    x2 = x.reshape(R, L)

    # Tile sizing: ~target_tile_bytes per input tile, lane-dense last dim.
    itemsize = jnp.dtype(x.dtype).itemsize
    target_elems = max(128, target_tile_bytes // itemsize)
    TN = _pick_block(L, 128, target_elems)
    TM = _pick_block(R, 8, max(1, target_elems // TN))

    grid = (R // TM, L // TN)

    grid_spec = pltpu.PrefetchScalarGridSpec(
        num_scalar_prefetch=0,
        grid=grid,
        in_specs=[
            pl.BlockSpec((TM, TN), lambda i, j: (i, j)),   # x tile
            pl.BlockSpec((TM, 1), lambda i, j: (i, 0)),    # scale column
            pl.BlockSpec((TM, 1), lambda i, j: (i, 0)),    # shift column
        ],
        out_specs=pl.BlockSpec((TM, TN), lambda i, j: (i, j)),
    )

    out2 = pl.pallas_call(
        _normalize_kernel,
        out_shape=jax.ShapeDtypeStruct((R, L), x.dtype),
        grid_spec=grid_spec,
        compiler_params=pltpu.CompilerParams(
            dimension_semantics=("parallel", "parallel"),
        ),
    )(x2, row_scale, row_shift)

    return out2.reshape(B, C, H, W)


if __name__ == "__main__":
    key = jax.random.PRNGKey(0)
    B, C, H, W = 2, 4, 16, 16

    # Deterministic "dataset statistics" (module __init__ takes per-channel means/sds).
    means = jnp.array([0.485, 0.456, 0.406, 0.5][:C], dtype=jnp.float32)
    sds = jnp.array([0.229, 0.224, 0.225, 0.25][:C], dtype=jnp.float32)

    x = jax.random.normal(key, (B, C, H, W), dtype=jnp.float32)

    out = normalize_layer(x, means, sds)
    out = jax.block_until_ready(out)

    # Reference check in plain JAX (mirrors PyTorch broadcast semantics).
    ref = (x - means[None, :, None, None]) / sds[None, :, None, None]
    assert out.shape == (B, C, H, W)
    # Folded x*(1/s) + (-m/s) differs from (x-m)/s by a few f32 ulps only.
    assert jnp.allclose(out, ref, atol=1e-5, rtol=1e-5)

    print("KERNEL_OK")
</pallas_src>

<mosaic_0001>
module attributes {stable_mosaic.version = 11 : i64} {
  func.func @_normalize_kernel(%arg0: i32, %arg1: i32, %arg2: memref<8x256xf32, #tpu.memory_space<vmem>>, %arg3: memref<8x1xf32, #tpu.memory_space<vmem>>, %arg4: memref<8x1xf32, #tpu.memory_space<vmem>>, %arg5: memref<8x256xf32, #tpu.memory_space<vmem>>) attributes {dimension_semantics = [#tpu.dimension_semantics<parallel>, #tpu.dimension_semantics<parallel>], iteration_bounds = array<i64: 1, 1>, scalar_prefetch = 0 : i64, scratch_operands = 0 : i64, tpu.core_type = #tpu.core_type<tc>, window_params = [{transform_indices = @transform_0, window_bounds = array<i64: 8, 256>}, {transform_indices = @transform_1, window_bounds = array<i64: 8, 1>}, {transform_indices = @transform_2, window_bounds = array<i64: 8, 1>}, {transform_indices = @transform_3, window_bounds = array<i64: 8, 256>}]} {
    %c0 = arith.constant 0 : index
    %c0_0 = arith.constant 0 : index
    %0 = vector.load %arg2[%c0, %c0_0] : memref<8x256xf32, #tpu.memory_space<vmem>>, vector<8x256xf32>
    %c0_1 = arith.constant 0 : index
    %c0_2 = arith.constant 0 : index
    %1 = vector.load %arg3[%c0_1, %c0_2] : memref<8x1xf32, #tpu.memory_space<vmem>>, vector<8x1xf32>
    %2 = vector.broadcast %1 : vector<8x1xf32> to vector<8x256xf32>
    %3 = arith.mulf %0, %2 : vector<8x256xf32>
    %c0_3 = arith.constant 0 : index
    %c0_4 = arith.constant 0 : index
    %4 = vector.load %arg4[%c0_3, %c0_4] : memref<8x1xf32, #tpu.memory_space<vmem>>, vector<8x1xf32>
    %5 = vector.broadcast %4 : vector<8x1xf32> to vector<8x256xf32>
    %6 = arith.addf %3, %5 : vector<8x256xf32>
    %c0_5 = arith.constant 0 : index
    %c0_6 = arith.constant 0 : index
    %7 = vector.load %arg5[%c0_5, %c0_6] : memref<8x256xf32, #tpu.memory_space<vmem>>, vector<8x256xf32>
    tpu.vector_store %arg5[%c0_5, %c0_6], %6 {strides = array<i32>} : memref<8x256xf32, #tpu.memory_space<vmem>>, vector<8x256xf32>,
    return
  }
  func.func @transform_0(%arg0: i32, %arg1: i32) -> (i32, i32) {
    %c0_i32 = arith.constant 0 : i32
    return %arg0, %arg1 : i32, i32
  }
  func.func @transform_1(%arg0: i32, %arg1: i32) -> (i32, i32) {
    %c0_i32 = arith.constant 0 : i32
    %c0_i32_0 = arith.constant 0 : i32
    return %arg0, %c0_i32 : i32, i32
  }
  func.func @transform_2(%arg0: i32, %arg1: i32) -> (i32, i32) {
    %c0_i32 = arith.constant 0 : i32
    %c0_i32_0 = arith.constant 0 : i32
    return %arg0, %c0_i32 : i32, i32
  }
  func.func @transform_3(%arg0: i32, %arg1: i32) -> (i32, i32) {
    %c0_i32 = arith.constant 0 : i32
    return %arg0, %arg1 : i32, i32
  }
}

</mosaic_0001>

<bundles_post_ra>
// kernel: tpu_custom_call.1
= control target key start
LH: loop header
LB: loop body
LE: loop exit
PB: predicated region body
PF: predicated region fallthrough
CT: control target
= control target key end

     0   :  { %v74_v1 = vmov 0   ;;  %s111_s0 = inlined_call_operand.vmem [shape: f32[8,256], index: 0, kind: input, shape index: {}]   ;;  %s112_s1 = inlined_call_operand.vmem [shape: f32[8,1], index: 1, kind: input, shape index: {}]   ;;  %s113_s2 = inlined_call_operand.vmem [shape: f32[8,1], index: 2, kind: input, shape index: {}]   ;;  %s114_s3 = inlined_call_operand.hbm [shape: f32[8,256], index: 3, kind: output, shape index: {}]  }
   0x1   :  { %v17_v0 = vld [vmem:[%s112_s1] sm:$0xff]  ;;  %51 = vset.pattern.permute.xlu0 %v74_v1 }
   0x2   :  { %8 = vsyncpa [#allocation3], 0  ;;  %20 = vperm.xlu0 %51, %v17_v0   ;;  %v25_v2 = vld [vmem:[%s113_s2] sm:$0xff]  ;;  %v16_v5 = vld [vmem:[%s111_s0 + $0x8] sm:$0xff]  ;;  %s75_s20 = smov [#allocation2]  }
   0x3   :  { %v15_v4 = vld [vmem:[%s111_s0] sm:$0xff]  ;;  %s41_s1 = sshll.u32 %s75_s20, 4  ;;  %s42_s1 = int_to_ptr.vmem [resolvable:$true] %s41_s1 }
   0x4   :  { %s52_s2 = scalar_lea.vmem %s42_s1, 256  ;;  %p57_p1 = scmp.lt.s32.totalorder %s42_s1, %s42_s1 }
   0x5   :  { %p53_p0 = scmp.ne.s32.totalorder %s42_s1, %s52_s2  ;;  %p58_p2 = scmp.lt.s32.totalorder %s52_s2, %s52_s2 }
   0x6   :  { %28 = vperm.xlu0 %51, %v25_v2  }
   0x7   :  { %p59_p3 = por %p58_p2, %p57_p1 }
   0x9   :  { %p60_p4 = pnand %p59_p3, %p53_p0 }
  0x7d   :  { %v21_v3 = vpop.permute.xlu0 %20 }
  0x7e   :  { %v23_v6 = vmul.f32 %v21_v3, %v15_v4  ;;  %v24_v7 = vmul.f32 %v21_v3, %v16_v5 }
  0x81   :  { %v29_v8 = vpop.permute.xlu0 %28 }
  0x82   :  { %v31_v9 = vadd.f32 %v29_v8, %v23_v6  ;;  %v32_v10 = vadd.f32 %v29_v8, %v24_v7 }
  0x84   :  { %33 = vst [vmem:[#allocation2] sm:$0xff] %v31_v9  ;;  %34 = vst [vmem:[#allocation2 + $0x8] sm:$0xff] %v32_v10 }
  0x85   :  { %63 = shalt.err (!%p60_p4)
}
  0x86   :  { %44 = dma.vmem_to_hbm [thread:$0]  %s42_s1, 256, %s114_s3, [#allocation3]  }
  0x87   :  { %72 = dma.done.wait [#allocation3], 256  }
  0x88   :  { %73 = vsyncadd [#allocation3], 4294967040 }
  0x89   :  { %48 = vsyncpa [#allocation3], 1 }

</bundles_post_ra>
